<compile_context>
chip_gen: v5e
topology: v5e:2x2
jax: 0.10.0
libtpu: 0.0.40
codegen_flags: <defaults>
</compile_context>

<pallas_src>
import functools

import numpy as np
import jax
import jax.numpy as jnp
from jax.experimental import pallas as pl
from jax.experimental.pallas import tpu as pltpu


# ----------------------------------------------------------------------------
# Small helpers
# ----------------------------------------------------------------------------
def _round_up(x, m):
    return ((x + m - 1) // m) * m


def _pad2(x, rows, cols):
    r, c = x.shape
    if r == rows and c == cols:
        return x
    return jnp.pad(x, ((0, rows - r), (0, cols - c)))


def _pick_tile(n_pad, preferred):
    """Largest multiple-of-128 tile <= preferred that divides n_pad."""
    t = min(preferred, n_pad)
    while n_pad % t:
        t -= 128
    return t


def _vmem_cap_bytes():
    """Generation-aware scoped-VMEM budget with headroom for Mosaic internals:
    ~48 MiB on v7x (64 MiB physical), ~102 MiB on v5e/v6e (128 MiB physical)."""
    phys = 64 << 20
    try:
        info = pltpu.get_tpu_info()
        for name in ("vmem_capacity_bytes", "vmem_size_bytes", "vmem_bytes"):
            v = getattr(info, name, None)
            if isinstance(v, int) and v > 0:
                phys = v
                break
    except Exception:
        pass
    return int(min(phys - (16 << 20), int(0.8 * phys)))


_VMEM_CAP = _vmem_cap_bytes()
_HEADROOM = 2 << 20          # slack for Mosaic scratch / semaphores / metadata


# ----------------------------------------------------------------------------
# Pallas kernels
# ----------------------------------------------------------------------------
def _spmm_bias_relu_res_kernel(a_ref, m_ref, b_ref, o_ref):
    """o = relu(A_stripe @ M + b); M fully resident, no reduction grid axis."""
    z = jnp.dot(a_ref[...], m_ref[...], preferred_element_type=jnp.float32)
    o_ref[...] = jnp.maximum(z + b_ref[...], 0.0).astype(o_ref.dtype)


def _spmm_bias_relu_kt_kernel(a_ref, m_ref, b_ref, o_ref, acc_ref):
    """Fallback: o = relu(A @ M + b); node axis K-tiled, f32 accumulator."""
    k = pl.program_id(1)

    @pl.when(k == 0)
    def _():
        acc_ref[...] = jnp.zeros_like(acc_ref)

    acc_ref[...] += jnp.dot(a_ref[...], m_ref[...],
                            preferred_element_type=jnp.float32)

    @pl.when(k == pl.num_programs(1) - 1)
    def _():
        o_ref[...] = jnp.maximum(acc_ref[...] + b_ref[...],
                                 0.0).astype(o_ref.dtype)


def _spmm_w_bias_relu_res_kernel(a_ref, h_ref, w_ref, b_ref, o_ref):
    """o = relu((A_stripe @ H) @ W + b); H and W fully resident."""
    ah = jnp.dot(a_ref[...], h_ref[...], preferred_element_type=jnp.float32)
    # NOTE: the second matmul operand is cast to bf16 for the MXU; the plain-JAX
    # reference path applies the identical cast so the tight check matches.
    z = jnp.dot(ah.astype(jnp.bfloat16), w_ref[...],
                preferred_element_type=jnp.float32) + b_ref[...]
    o_ref[...] = jnp.maximum(z, 0.0).astype(o_ref.dtype)


def _spmm_w_bias_relu_kt_kernel(a_ref, h_ref, w_ref, b_ref, o_ref, acc_ref):
    """Fallback: A@H K-tiled (f32 acc), W + bias + relu applied in the epilogue."""
    k = pl.program_id(1)

    @pl.when(k == 0)
    def _():
        acc_ref[...] = jnp.zeros_like(acc_ref)

    acc_ref[...] += jnp.dot(a_ref[...], h_ref[...],
                            preferred_element_type=jnp.float32)

    @pl.when(k == pl.num_programs(1) - 1)
    def _():
        z = jnp.dot(acc_ref[...].astype(jnp.bfloat16), w_ref[...],
                    preferred_element_type=jnp.float32) + b_ref[...]
        o_ref[...] = jnp.maximum(z, 0.0).astype(o_ref.dtype)


def _gram_kernel(xl_ref, xr_ref, o_ref):
    """o tile (i, j) = X_i @ X_j.T, tiled over BOTH output dimensions."""
    o_ref[...] = jax.lax.dot_general(
        xl_ref[...], xr_ref[...],
        dimension_numbers=(((1,), (1,)), ((), ())),
        preferred_element_type=jnp.float32).astype(o_ref.dtype)


# ----------------------------------------------------------------------------
# Wrappers around pallas_call
# ----------------------------------------------------------------------------
def spmm_bias_relu(a_pad, m, b, *, out_dtype=jnp.bfloat16,
                   tm_pref=1024, tk_pref=1024, force_ktiled=False):
    """relu(A_pad @ M + b).  a_pad: (n_pad, n_pad) bf16.  Returns (n_pad, f).
    Padded rows hold relu(b); A_pad's zero columns keep them from contaminating
    valid rows and they are sliced off at the end of the forward pass."""
    n_pad = a_pad.shape[0]
    f = m.shape[1]
    f_pad = _round_up(f, 128)                               # lane-dense output
    ob = np.dtype(out_dtype).itemsize
    m_p = _pad2(m, n_pad, f_pad).astype(jnp.bfloat16)
    b_p = jnp.pad(b.astype(jnp.float32).reshape(1, -1), ((0, 0), (0, f_pad - f)))

    # --- Resident-M path: A read exactly once, no reduction grid axis -------
    def res_need(tm_):
        return (2 * tm_ * n_pad * 2 + 2 * n_pad * f_pad * 2
                + 2 * tm_ * f_pad * ob + 2 * f_pad * 4 + _HEADROOM)

    tm = _pick_tile(n_pad, min(tm_pref, n_pad))
    while n_pad // tm < 4 and tm > 128:      # >= 4 row blocks -> both v7x TCs busy
        tm = _pick_tile(n_pad, tm - 128)
    while tm > 128 and res_need(tm) > _VMEM_CAP:
        tm = _pick_tile(n_pad, tm - 128)

    if not force_ktiled and res_need(tm) <= _VMEM_CAP:
        out = pl.pallas_call(
            _spmm_bias_relu_res_kernel,
            out_shape=jax.ShapeDtypeStruct((n_pad, f_pad), out_dtype),
            grid=(n_pad // tm,),
            in_specs=[
                pl.BlockSpec((tm, n_pad), lambda i: (i, 0)),      # A row stripe
                pl.BlockSpec((n_pad, f_pad), lambda i: (0, 0)),   # M resident
                pl.BlockSpec((1, f_pad), lambda i: (0, 0)),       # bias
            ],
            out_specs=pl.BlockSpec((tm, f_pad), lambda i: (i, 0)),
            compiler_params=pltpu.CompilerParams(
                dimension_semantics=("parallel",),
                vmem_limit_bytes=_VMEM_CAP),
        )(a_pad, m_p, b_p)
        return out[:, :f]

    # --- Fallback: K-tile the node (contraction) axis -----------------------
    tm = _pick_tile(n_pad, min(tm_pref, n_pad))
    tk = _pick_tile(n_pad, min(tk_pref, n_pad))

    def kt_need(tm_, tk_):
        return (2 * tm_ * tk_ * 2 + 2 * tk_ * f_pad * 2
                + 2 * tm_ * f_pad * ob + tm_ * f_pad * 4
                + 2 * f_pad * 4 + _HEADROOM)

    while kt_need(tm, tk) > _VMEM_CAP and (tm > 128 or tk > 128):
        if tk >= tm and tk > 128:
            tk = _pick_tile(n_pad, tk - 128)
        else:
            tm = _pick_tile(n_pad, tm - 128)

    out = pl.pallas_call(
        _spmm_bias_relu_kt_kernel,
        out_shape=jax.ShapeDtypeStruct((n_pad, f_pad), out_dtype),
        grid=(n_pad // tm, n_pad // tk),
        in_specs=[
            pl.BlockSpec((tm, tk), lambda i, k: (i, k)),          # A tile
            pl.BlockSpec((tk, f_pad), lambda i, k: (k, 0)),       # M K-tile
            pl.BlockSpec((1, f_pad), lambda i, k: (0, 0)),        # bias
        ],
        out_specs=pl.BlockSpec((tm, f_pad), lambda i, k: (i, 0)),
        scratch_shapes=[pltpu.VMEM((tm, f_pad), jnp.float32)],
        compiler_params=pltpu.CompilerParams(
            dimension_semantics=("parallel", "arbitrary"),
            vmem_limit_bytes=_VMEM_CAP),
    )(a_pad, m_p, b_p)
    return out[:, :f]


def spmm_w_bias_relu(a_pad, h, w, b, *, out_dtype=jnp.float32,
                     tm_pref=1024, tk_pref=1024, force_ktiled=False):
    """relu((A_pad @ H) @ W + b) for the f_in < f_out case (attr gc2)."""
    n_pad = a_pad.shape[0]
    fi, fo = w.shape
    fi_pad = _round_up(fi, 128)
    fo_pad = _round_up(fo, 128)
    ob = np.dtype(out_dtype).itemsize
    h_p = _pad2(h, n_pad, fi_pad).astype(jnp.bfloat16)
    w_p = _pad2(w, fi_pad, fo_pad).astype(jnp.bfloat16)
    b_p = jnp.pad(b.astype(jnp.float32).reshape(1, -1), ((0, 0), (0, fo_pad - fo)))
    w_bytes = 2 * fi_pad * fo_pad * 2

    def res_need(tm_):
        return (2 * tm_ * n_pad * 2 + 2 * n_pad * fi_pad * 2 + w_bytes
                + 2 * tm_ * fo_pad * ob + tm_ * fi_pad * 4
                + 2 * fo_pad * 4 + _HEADROOM)

    tm = _pick_tile(n_pad, min(tm_pref, n_pad))
    while n_pad // tm < 4 and tm > 128:
        tm = _pick_tile(n_pad, tm - 128)
    while tm > 128 and res_need(tm) > _VMEM_CAP:
        tm = _pick_tile(n_pad, tm - 128)

    if not force_ktiled and res_need(tm) <= _VMEM_CAP:
        out = pl.pallas_call(
            _spmm_w_bias_relu_res_kernel,
            out_shape=jax.ShapeDtypeStruct((n_pad, fo_pad), out_dtype),
            grid=(n_pad // tm,),
            in_specs=[
                pl.BlockSpec((tm, n_pad), lambda i: (i, 0)),       # A row stripe
                pl.BlockSpec((n_pad, fi_pad), lambda i: (0, 0)),   # H resident
                pl.BlockSpec((fi_pad, fo_pad), lambda i: (0, 0)),  # W resident
                pl.BlockSpec((1, fo_pad), lambda i: (0, 0)),       # bias
            ],
            out_specs=pl.BlockSpec((tm, fo_pad), lambda i: (i, 0)),
            compiler_params=pltpu.CompilerParams(
                dimension_semantics=("parallel",),
                vmem_limit_bytes=_VMEM_CAP),
        )(a_pad, h_p, w_p, b_p)
        return out[:, :fo]

    tm = _pick_tile(n_pad, min(tm_pref, n_pad))
    tk = _pick_tile(n_pad, min(tk_pref, n_pad))

    def kt_need(tm_, tk_):
        return (2 * tm_ * tk_ * 2 + 2 * tk_ * fi_pad * 2 + w_bytes
                + 2 * tm_ * fo_pad * ob + tm_ * fi_pad * 4
                + 2 * fo_pad * 4 + _HEADROOM)

    while kt_need(tm, tk) > _VMEM_CAP and (tm > 128 or tk > 128):
        if tk >= tm and tk > 128:
            tk = _pick_tile(n_pad, tk - 128)
        else:
            tm = _pick_tile(n_pad, tm - 128)

    out = pl.pallas_call(
        _spmm_w_bias_relu_kt_kernel,
        out_shape=jax.ShapeDtypeStruct((n_pad, fo_pad), out_dtype),
        grid=(n_pad // tm, n_pad // tk),
        in_specs=[
            pl.BlockSpec((tm, tk), lambda i, k: (i, k)),           # A tile
            pl.BlockSpec((tk, fi_pad), lambda i, k: (k, 0)),       # H K-tile
            pl.BlockSpec((fi_pad, fo_pad), lambda i, k: (0, 0)),   # W (full)
            pl.BlockSpec((1, fo_pad), lambda i, k: (0, 0)),        # bias
        ],
        out_specs=pl.BlockSpec((tm, fo_pad), lambda i, k: (i, 0)),
        scratch_shapes=[pltpu.VMEM((tm, fi_pad), jnp.float32)],
        compiler_params=pltpu.CompilerParams(
            dimension_semantics=("parallel", "arbitrary"),
            vmem_limit_bytes=_VMEM_CAP),
    )(a_pad, h_p, w_p, b_p)
    return out[:, :fo]


def gram(x, *, out_dtype=jnp.float32, tile_pref=512):
    """X @ X.T with 2-D output tiling.  x: (n_pad, d).  Returns (n_pad, n_pad)."""
    n_pad, d = x.shape
    d_pad = _round_up(d, 128)
    ob = np.dtype(out_dtype).itemsize
    x_p = _pad2(x, n_pad, d_pad).astype(jnp.bfloat16)

    t = _pick_tile(n_pad, min(tile_pref, n_pad))
    while t > 128 and (4 * t * d_pad * 2 + 2 * t * t * ob + _HEADROOM) > _VMEM_CAP:
        t = _pick_tile(n_pad, t - 128)

    return pl.pallas_call(
        _gram_kernel,
        out_shape=jax.ShapeDtypeStruct((n_pad, n_pad), out_dtype),
        grid=(n_pad // t, n_pad // t),
        in_specs=[pl.BlockSpec((t, d_pad), lambda i, j: (i, 0)),
                  pl.BlockSpec((t, d_pad), lambda i, j: (j, 0))],
        out_specs=pl.BlockSpec((t, t), lambda i, j: (i, j)),
        compiler_params=pltpu.CompilerParams(
            dimension_semantics=("parallel", "parallel"),
            vmem_limit_bytes=_VMEM_CAP),
    )(x_p, x_p)


# ----------------------------------------------------------------------------
# Plain-JAX equivalents (identical math & casts) used for the tight kernel check
# ----------------------------------------------------------------------------
def _spmm_bias_relu_ref(a_pad, m, b, *, out_dtype=jnp.bfloat16):
    n_pad = a_pad.shape[0]
    m_p = _pad2(m, n_pad, m.shape[1]).astype(jnp.bfloat16)
    z = jnp.dot(a_pad, m_p, preferred_element_type=jnp.float32)
    return jnp.maximum(z + b.astype(jnp.float32)[None, :], 0.0).astype(out_dtype)


def _spmm_w_bias_relu_ref(a_pad, h, w, b, *, out_dtype=jnp.float32):
    n_pad = a_pad.shape[0]
    h_p = _pad2(h, n_pad, h.shape[1]).astype(jnp.bfloat16)
    ah = jnp.dot(a_pad, h_p, preferred_element_type=jnp.float32)
    z = jnp.dot(ah.astype(jnp.bfloat16), w.astype(jnp.bfloat16),
                preferred_element_type=jnp.float32) + b.astype(jnp.float32)[None, :]
    return jnp.maximum(z, 0.0).astype(out_dtype)


def _gram_ref(x, *, out_dtype=jnp.float32):
    xb = x.astype(jnp.bfloat16)
    return jnp.dot(xb, xb.T, preferred_element_type=jnp.float32).astype(out_dtype)


# ----------------------------------------------------------------------------
# ALARM model: parameter init + forward
# ----------------------------------------------------------------------------
def _glorot(key, shape):
    fan_in, fan_out = shape
    lim = (6.0 / (fan_in + fan_out)) ** 0.5
    return jax.random.uniform(key, shape, jnp.float32, -lim, lim)


def init_alarm_params(key, feat_size, hidden_size, view_num):
    single_view = feat_size // view_num
    view_feat = [single_view] * (view_num - 1)
    view_feat.append(single_view + feat_size % view_num)

    keys = iter(jax.random.split(key, 4 * view_num + 16))
    params = {
        "enc_gc1_w": [_glorot(next(keys), (view_feat[i], hidden_size))
                      for i in range(view_num)],
        "enc_gc1_b": [0.01 * jax.random.normal(next(keys), (hidden_size,))
                      for _ in range(view_num)],
        "enc_gc2_w": _glorot(next(keys), (hidden_size, hidden_size)),
        "enc_gc2_b": 0.01 * jax.random.normal(next(keys), (hidden_size,)),
        "attr_gc1_w": _glorot(next(keys), (hidden_size * view_num, hidden_size)),
        "attr_gc1_b": 0.01 * jax.random.normal(next(keys), (hidden_size,)),
        "attr_gc2_w": _glorot(next(keys), (hidden_size, feat_size)),
        "attr_gc2_b": 0.01 * jax.random.normal(next(keys), (feat_size,)),
        "str_gc1_w": _glorot(next(keys), (hidden_size * view_num, hidden_size)),
        "str_gc1_b": 0.01 * jax.random.normal(next(keys), (hidden_size,)),
    }
    return params, single_view, view_feat


def alarm_forward(params, a, h, *, view_num, use_pallas=True):
    """Returns (struct_reconstructed (N,N) f32, x_hat (N, feat_size) f32)."""
    n, nfeat = h.shape
    hid = params["enc_gc2_w"].shape[0]
    single_view = nfeat // view_num
    view_feat = [single_view] * (view_num - 1) + [single_view + nfeat % view_num]

    n_pad = _round_up(n, 128) if n <= 512 else _round_up(n, 512)

    # Dense adjacency: cast to bf16 BEFORE padding (avoids an (n_pad, n_pad) f32
    # intermediate on the XLA side); 0/1 values are exact in bf16.
    a_pad = _pad2(a.astype(jnp.bfloat16), n_pad, n_pad)

    if use_pallas:
        spmm, spmm_w, gram_fn = spmm_bias_relu, spmm_w_bias_relu, gram
    else:  # same math / identical casts routed through XLA (tight check)
        spmm, spmm_w, gram_fn = (_spmm_bias_relu_ref, _spmm_w_bias_relu_ref,
                                 _gram_ref)

    # ---- Encoder: two A-sweeps total ---------------------------------------
    # gc1 of all views fused into ONE sweep: per-view bf16 H@W precompute,
    # column-concatenated == block-diagonal weight.
    h_bf = h.astype(jnp.bfloat16)
    hw1, off = [], 0
    for i in range(view_num):
        hv = h_bf[:, off:off + view_feat[i]]
        hw1.append(jnp.dot(hv, params["enc_gc1_w"][i].astype(jnp.bfloat16),
                           preferred_element_type=jnp.float32))
        off += view_feat[i]
    hw1 = jnp.concatenate(hw1, axis=1)                        # (n, hid*V)
    b1 = jnp.concatenate(params["enc_gc1_b"])
    x1 = spmm(a_pad, hw1, b1)                                 # (n_pad, hid*V) bf16

    # gc2 (shared weight) applied per view via einsum -> one sweep.
    w2 = params["enc_gc2_w"].astype(jnp.bfloat16)
    hw2 = jnp.einsum("nvh,hk->nvk", x1.reshape(n_pad, view_num, hid), w2,
                     preferred_element_type=jnp.float32
                     ).reshape(n_pad, view_num * hid)
    b2 = jnp.tile(params["enc_gc2_b"], view_num)
    x = spmm(a_pad, hw2, b2)                                  # (n_pad, hid*V) bf16
    # dropout(training=False) == identity; agg_type == 0 -> plain concat
    # (x's column layout IS the concat).
    # TODO(synk): agg_type==1 multiplies by torch.rand (non-deterministic) and
    # agg_type==2 is buggy in the reference; both intentionally not implemented.

    # ---- Decoders: attr.gc1 + struct.gc1 share ONE A-sweep ------------------
    w_dec = jnp.concatenate([params["attr_gc1_w"], params["str_gc1_w"]], axis=1)
    b_dec = jnp.concatenate([params["attr_gc1_b"], params["str_gc1_b"]])
    hw_dec = jnp.dot(x, w_dec.astype(jnp.bfloat16),
                     preferred_element_type=jnp.float32)      # (n_pad, 2*hid)
    d = spmm(a_pad, hw_dec, b_dec)                            # (n_pad, 2*hid) bf16
    ad, s = d[:, :hid], d[:, hid:]

    # attr.gc2: hid -> nfeat (f_in < f_out) => keep (A @ H) @ W, fused kernel.
    x_hat = spmm_w(a_pad, ad, params["attr_gc2_w"], params["attr_gc2_b"])

    # Structure decoder: s @ s.T
    struct = gram_fn(s)                                       # (n_pad, n_pad) f32

    return struct[:n, :n], x_hat[:n, :nfeat]


# ----------------------------------------------------------------------------
# Demo / smoke test
# ----------------------------------------------------------------------------
if __name__ == "__main__":
    N = 16            # nodes
    FEAT = 12         # feat_size
    HID = 8           # hidden_size
    VIEWS = 3         # view_num

    key = jax.random.PRNGKey(0)
    k_adj, k_feat, k_par = jax.random.split(key, 3)

    # Deterministic symmetric dense adjacency + node features.
    a = (jax.random.uniform(k_adj, (N, N)) < 0.3).astype(jnp.float32)
    a = jnp.maximum(a, a.T)
    h = jax.random.normal(k_feat, (N, FEAT), dtype=jnp.float32)

    params, single_view, view_feat = init_alarm_params(k_par, FEAT, HID, VIEWS)

    fwd = jax.jit(functools.partial(alarm_forward, view_num=VIEWS))
    struct, x_hat = fwd(params, a, h)
    jax.block_until_ready((struct, x_hat))

    assert struct.shape == (N, N)
    assert x_hat.shape == (N, FEAT)

    # (1) Tight check: identical math & casts routed through XLA instead of the
    #     Pallas kernels (validates the kernels themselves).
    struct_m, x_hat_m = alarm_forward(params, a, h, view_num=VIEWS,
                                      use_pallas=False)
    assert jnp.allclose(x_hat, x_hat_m, atol=5e-2, rtol=5e-2)
    assert jnp.allclose(struct, struct_m, atol=5e-2, rtol=5e-2)

    # (2) Loose check against the original per-view fp32 formulation (tolerance
    #     accounts for the bf16 MXU operands and bf16 intermediates).
    def ref_gc(a_, h_, w_, b_):
        return jnp.maximum(a_ @ h_ @ w_ + b_, 0.0)

    xs_ref = []
    for i in range(VIEWS):
        hv = h[:, i * single_view:] if i == VIEWS - 1 else \
             h[:, i * single_view:(i + 1) * single_view]
        xs_ref.append(ref_gc(a, hv, params["enc_gc1_w"][i], params["enc_gc1_b"][i]))
    xs_ref = [ref_gc(a, xi, params["enc_gc2_w"], params["enc_gc2_b"])
              for xi in xs_ref]
    x_ref = jnp.concatenate(xs_ref, axis=1)
    xh_ref = ref_gc(a, ref_gc(a, x_ref, params["attr_gc1_w"], params["attr_gc1_b"]),
                    params["attr_gc2_w"], params["attr_gc2_b"])
    s_ref = ref_gc(a, x_ref, params["str_gc1_w"], params["str_gc1_b"])
    st_ref = s_ref @ s_ref.T

    assert jnp.allclose(x_hat, xh_ref, atol=1.0, rtol=0.15)
    assert jnp.allclose(struct, st_ref, atol=1.0, rtol=0.15)

    # (3) Exercise the K-tiled fallback kernels directly (not hit above because
    #     the resident-M path wins at this problem size).
    n2 = 256
    a2 = (jax.random.uniform(jax.random.PRNGKey(1), (n2, n2)) < 0.1
          ).astype(jnp.bfloat16)
    m2 = jax.random.normal(jax.random.PRNGKey(2), (n2, 96), dtype=jnp.float32)
    bb2 = 0.01 * jax.random.normal(jax.random.PRNGKey(3), (96,))
    y_kt = spmm_bias_relu(a2, m2, bb2, tm_pref=128, tk_pref=128,
                          force_ktiled=True)
    y_rf = _spmm_bias_relu_ref(a2, m2, bb2)
    assert jnp.allclose(y_kt.astype(jnp.float32), y_rf.astype(jnp.float32),
                        atol=5e-2, rtol=5e-2)

    h2 = jax.random.normal(jax.random.PRNGKey(4), (n2, 40), dtype=jnp.float32)
    w2t = jax.random.normal(jax.random.PRNGKey(5), (40, 200),
                            dtype=jnp.float32) * 0.1
    bw2 = 0.01 * jax.random.normal(jax.random.PRNGKey(6), (200,))
    z_kt = spmm_w_bias_relu(a2, h2, w2t, bw2, tm_pref=128, tk_pref=128,
                            force_ktiled=True)
    z_rf = _spmm_w_bias_relu_ref(a2, h2, w2t, bw2)
    assert jnp.allclose(z_kt, z_rf, atol=5e-2, rtol=5e-2)

    jax.block_until_ready((y_kt, z_kt))
    print("KERNEL_OK")
</pallas_src>

<mosaic_0001>
module attributes {stable_mosaic.version = 11 : i64} {
  func.func @_spmm_bias_relu_res_kernel(%arg0: i32, %arg1: memref<128x128xbf16, #tpu.memory_space<vmem>>, %arg2: memref<128x128xbf16, #tpu.memory_space<vmem>>, %arg3: memref<1x128xf32, #tpu.memory_space<vmem>>, %arg4: memref<128x128xbf16, #tpu.memory_space<vmem>>) attributes {dimension_semantics = [#tpu.dimension_semantics<parallel>], iteration_bounds = array<i64: 1>, scalar_prefetch = 0 : i64, scratch_operands = 0 : i64, tpu.core_type = #tpu.core_type<tc>, window_params = [{transform_indices = @transform_0, window_bounds = array<i64: 128, 128>}, {pipeline_mode = #tpu.pipeline_mode<synchronous>, transform_indices = @transform_1, window_bounds = array<i64: 128, 128>}, {pipeline_mode = #tpu.pipeline_mode<synchronous>, transform_indices = @transform_2, window_bounds = array<i64: 1, 128>}, {transform_indices = @transform_3, window_bounds = array<i64: 128, 128>}]} {
    %c0 = arith.constant 0 : index
    %c0_0 = arith.constant 0 : index
    %0 = vector.load %arg1[%c0, %c0_0] : memref<128x128xbf16, #tpu.memory_space<vmem>>, vector<128x128xbf16>
    %c0_1 = arith.constant 0 : index
    %c0_2 = arith.constant 0 : index
    %1 = vector.load %arg2[%c0_1, %c0_2] : memref<128x128xbf16, #tpu.memory_space<vmem>>, vector<128x128xbf16>
    %cst = arith.constant dense<0.000000e+00> : vector<128x128xf32>
    %2 = tpu.matmul %0, %1, %cst {dimension_numbers = #tpu.dot_dimension_numbers<[1], [0], [0], [1], [0, 0, 1, 1], [], []>} : vector<128x128xbf16>, vector<128x128xbf16>, vector<128x128xf32> -> vector<128x128xf32>
    %c0_3 = arith.constant 0 : index
    %c0_4 = arith.constant 0 : index
    %3 = vector.load %arg3[%c0_3, %c0_4] : memref<1x128xf32, #tpu.memory_space<vmem>>, vector<1x128xf32>
    %4 = vector.broadcast %3 : vector<1x128xf32> to vector<128x128xf32>
    %5 = arith.addf %2, %4 : vector<128x128xf32>
    %cst_5 = arith.constant 0.000000e+00 : f32
    %6 = vector.broadcast %cst_5 : f32 to vector<128x128xf32>
    %7 = arith.maximumf %5, %6 : vector<128x128xf32>
    %8 = arith.truncf %7 : vector<128x128xf32> to vector<128x128xbf16>
    %c0_6 = arith.constant 0 : index
    %c0_7 = arith.constant 0 : index
    %9 = vector.load %arg4[%c0_6, %c0_7] : memref<128x128xbf16, #tpu.memory_space<vmem>>, vector<128x128xbf16>
    tpu.vector_store %arg4[%c0_6, %c0_7], %8 {strides = array<i32>} : memref<128x128xbf16, #tpu.memory_space<vmem>>, vector<128x128xbf16>,
    return
  }
  func.func @transform_0(%arg0: i32) -> (i32, i32) {
    %c0_i32 = arith.constant 0 : i32
    %c0_i32_0 = arith.constant 0 : i32
    return %arg0, %c0_i32 : i32, i32
  }
  func.func @transform_1(%arg0: i32) -> (i32, i32) {
    %c0_i32 = arith.constant 0 : i32
    %c0_i32_0 = arith.constant 0 : i32
    %c0_i32_1 = arith.constant 0 : i32
    return %c0_i32, %c0_i32_0 : i32, i32
  }
  func.func @transform_2(%arg0: i32) -> (i32, i32) {
    %c0_i32 = arith.constant 0 : i32
    %c0_i32_0 = arith.constant 0 : i32
    %c0_i32_1 = arith.constant 0 : i32
    return %c0_i32, %c0_i32_0 : i32, i32
  }
  func.func @transform_3(%arg0: i32) -> (i32, i32) {
    %c0_i32 = arith.constant 0 : i32
    %c0_i32_0 = arith.constant 0 : i32
    return %arg0, %c0_i32 : i32, i32
  }
}

module attributes {stable_mosaic.version = 11 : i64} {
  func.func @_gram_kernel(%arg0: i32, %arg1: i32, %arg2: memref<128x128xbf16, #tpu.memory_space<vmem>>, %arg3: memref<128x128xbf16, #tpu.memory_space<vmem>>, %arg4: memref<128x128xf32, #tpu.memory_space<vmem>>) attributes {dimension_semantics = [#tpu.dimension_semantics<parallel>, #tpu.dimension_semantics<parallel>], iteration_bounds = array<i64: 1, 1>, scalar_prefetch = 0 : i64, scratch_operands = 0 : i64, tpu.core_type = #tpu.core_type<tc>, window_params = [{transform_indices = @transform_0, window_bounds = array<i64: 128, 128>}, {transform_indices = @transform_1, window_bounds = array<i64: 128, 128>}, {transform_indices = @transform_2, window_bounds = array<i64: 128, 128>}]} {
    %c0 = arith.constant 0 : index
    %c0_0 = arith.constant 0 : index
    %0 = vector.load %arg2[%c0, %c0_0] : memref<128x128xbf16, #tpu.memory_space<vmem>>, vector<128x128xbf16>
    %c0_1 = arith.constant 0 : index
    %c0_2 = arith.constant 0 : index
    %1 = vector.load %arg3[%c0_1, %c0_2] : memref<128x128xbf16, #tpu.memory_space<vmem>>, vector<128x128xbf16>
    %cst = arith.constant dense<0.000000e+00> : vector<128x128xf32>
    %2 = tpu.matmul %0, %1, %cst {dimension_numbers = #tpu.dot_dimension_numbers<[1], [1], [0], [0], [0, 0, 1, 0], [], []>} : vector<128x128xbf16>, vector<128x128xbf16>, vector<128x128xf32> -> vector<128x128xf32>
    %c0_3 = arith.constant 0 : index
    %c0_4 = arith.constant 0 : index
    %3 = vector.load %arg4[%c0_3, %c0_4] : memref<128x128xf32, #tpu.memory_space<vmem>>, vector<128x128xf32>
    tpu.vector_store %arg4[%c0_3, %c0_4], %2 {strides = array<i32>} : memref<128x128xf32, #tpu.memory_space<vmem>>, vector<128x128xf32>,
    return
  }
  func.func @transform_0(%arg0: i32, %arg1: i32) -> (i32, i32) {
    %c0_i32 = arith.constant 0 : i32
    %c0_i32_0 = arith.constant 0 : i32
    return %arg0, %c0_i32 : i32, i32
  }
  func.func @transform_1(%arg0: i32, %arg1: i32) -> (i32, i32) {
    %c0_i32 = arith.constant 0 : i32
    %c0_i32_0 = arith.constant 0 : i32
    return %arg1, %c0_i32 : i32, i32
  }
  func.func @transform_2(%arg0: i32, %arg1: i32) -> (i32, i32) {
    %c0_i32 = arith.constant 0 : i32
    return %arg0, %arg1 : i32, i32
  }
}

module attributes {stable_mosaic.version = 11 : i64} {
  func.func @_spmm_w_bias_relu_res_kernel(%arg0: i32, %arg1: memref<128x128xbf16, #tpu.memory_space<vmem>>, %arg2: memref<128x128xbf16, #tpu.memory_space<vmem>>, %arg3: memref<128x128xbf16, #tpu.memory_space<vmem>>, %arg4: memref<1x128xf32, #tpu.memory_space<vmem>>, %arg5: memref<128x128xf32, #tpu.memory_space<vmem>>) attributes {dimension_semantics = [#tpu.dimension_semantics<parallel>], iteration_bounds = array<i64: 1>, scalar_prefetch = 0 : i64, scratch_operands = 0 : i64, tpu.core_type = #tpu.core_type<tc>, window_params = [{transform_indices = @transform_0, window_bounds = array<i64: 128, 128>}, {pipeline_mode = #tpu.pipeline_mode<synchronous>, transform_indices = @transform_1, window_bounds = array<i64: 128, 128>}, {pipeline_mode = #tpu.pipeline_mode<synchronous>, transform_indices = @transform_2, window_bounds = array<i64: 128, 128>}, {pipeline_mode = #tpu.pipeline_mode<synchronous>, transform_indices = @transform_3, window_bounds = array<i64: 1, 128>}, {transform_indices = @transform_4, window_bounds = array<i64: 128, 128>}]} {
    %c0 = arith.constant 0 : index
    %c0_0 = arith.constant 0 : index
    %0 = vector.load %arg1[%c0, %c0_0] : memref<128x128xbf16, #tpu.memory_space<vmem>>, vector<128x128xbf16>
    %c0_1 = arith.constant 0 : index
    %c0_2 = arith.constant 0 : index
    %1 = vector.load %arg2[%c0_1, %c0_2] : memref<128x128xbf16, #tpu.memory_space<vmem>>, vector<128x128xbf16>
    %cst = arith.constant dense<0.000000e+00> : vector<128x128xf32>
    %2 = tpu.matmul %0, %1, %cst {dimension_numbers = #tpu.dot_dimension_numbers<[1], [0], [0], [1], [0, 0, 1, 1], [], []>} : vector<128x128xbf16>, vector<128x128xbf16>, vector<128x128xf32> -> vector<128x128xf32>
    %3 = arith.truncf %2 : vector<128x128xf32> to vector<128x128xbf16>
    %c0_3 = arith.constant 0 : index
    %c0_4 = arith.constant 0 : index
    %4 = vector.load %arg3[%c0_3, %c0_4] : memref<128x128xbf16, #tpu.memory_space<vmem>>, vector<128x128xbf16>
    %cst_5 = arith.constant dense<0.000000e+00> : vector<128x128xf32>
    %5 = tpu.matmul %3, %4, %cst_5 {dimension_numbers = #tpu.dot_dimension_numbers<[1], [0], [0], [1], [0, 0, 1, 1], [], []>} : vector<128x128xbf16>, vector<128x128xbf16>, vector<128x128xf32> -> vector<128x128xf32>
    %c0_6 = arith.constant 0 : index
    %c0_7 = arith.constant 0 : index
    %6 = vector.load %arg4[%c0_6, %c0_7] : memref<1x128xf32, #tpu.memory_space<vmem>>, vector<1x128xf32>
    %7 = vector.broadcast %6 : vector<1x128xf32> to vector<128x128xf32>
    %8 = arith.addf %5, %7 : vector<128x128xf32>
    %cst_8 = arith.constant 0.000000e+00 : f32
    %9 = vector.broadcast %cst_8 : f32 to vector<128x128xf32>
    %10 = arith.maximumf %8, %9 : vector<128x128xf32>
    %c0_9 = arith.constant 0 : index
    %c0_10 = arith.constant 0 : index
    %11 = vector.load %arg5[%c0_9, %c0_10] : memref<128x128xf32, #tpu.memory_space<vmem>>, vector<128x128xf32>
    tpu.vector_store %arg5[%c0_9, %c0_10], %10 {strides = array<i32>} : memref<128x128xf32, #tpu.memory_space<vmem>>, vector<128x128xf32>,
    return
  }
  func.func @transform_0(%arg0: i32) -> (i32, i32) {
    %c0_i32 = arith.constant 0 : i32
    %c0_i32_0 = arith.constant 0 : i32
    return %arg0, %c0_i32 : i32, i32
  }
  func.func @transform_1(%arg0: i32) -> (i32, i32) {
    %c0_i32 = arith.constant 0 : i32
    %c0_i32_0 = arith.constant 0 : i32
    %c0_i32_1 = arith.constant 0 : i32
    return %c0_i32, %c0_i32_0 : i32, i32
  }
  func.func @transform_2(%arg0: i32) -> (i32, i32) {
    %c0_i32 = arith.constant 0 : i32
    %c0_i32_0 = arith.constant 0 : i32
    %c0_i32_1 = arith.constant 0 : i32
    return %c0_i32, %c0_i32_0 : i32, i32
  }
  func.func @transform_3(%arg0: i32) -> (i32, i32) {
    %c0_i32 = arith.constant 0 : i32
    %c0_i32_0 = arith.constant 0 : i32
    %c0_i32_1 = arith.constant 0 : i32
    return %c0_i32, %c0_i32_0 : i32, i32
  }
  func.func @transform_4(%arg0: i32) -> (i32, i32) {
    %c0_i32 = arith.constant 0 : i32
    %c0_i32_0 = arith.constant 0 : i32
    return %arg0, %c0_i32 : i32, i32
  }
}

</mosaic_0001>

<bundles_post_ra>
// kernel: tile.8
= control target key start
LH: loop header
LB: loop body
LE: loop exit
PB: predicated region body
PF: predicated region fallthrough
CT: control target
= control target key end

     0   :  { %s22_s0 = inlined_call_operand.vmem [shape: f32[8], index: 0, kind: input, shape index: {}]   ;;  %s23_s1 = inlined_call_operand.vmem [shape: f32[3,8], index: 1, kind: output, shape index: {}]  }
   0x1   :  { %v4_v0 = vld [vmem:[%s22_s0] ss:$0 sm:$0xff] }
   0x2   :  { %5 = vst [vmem:[%s23_s1] sm:$0xf] %v4_v0 }

// kernel: tile.9
= control target key start
LH: loop header
LB: loop body
LE: loop exit
PB: predicated region body
PF: predicated region fallthrough
CT: control target
= control target key end

     0   :  { %s30_s8 = smov 8   ;;  %vm7_vm0 = vcmask 64512   ;;  %vm13_vm1 = vcmask 195712   ;;  %vm19_vm2 = vcmask 130112   ;;  %s47_s0 = inlined_call_operand.vmem [shape: f32[3,8], index: 0, kind: input, shape index: {}]   ;;  %s48_s1 = inlined_call_operand.vmem [shape: f32[1,24], index: 1, kind: output, shape index: {}]  }
   0x1   :  { %v4_v0 = vld [vmem:[%s47_s0] sm:$0xf]  ;;  %s29_s0 = smov 16  }
   0x2   :  { %5 = vst [vmem:[#allocation1] sm:$0xf] %v4_v0 }
   0x9   :  { %v10_v1 = vld [vmem:[#allocation1 + $0x2] sm:$0x1]   ;;  %v16_v2 = vld [vmem:[#allocation1 + $0x1] sm:$0x1]   ;;  %v6_v3 = vld [vmem:[#allocation1] sm:$0x1]  }
   0xa   :  { %11 = vrot.lane.b32.xlu0 %v10_v1, %s29_s0  ;;  %8 = vst.msk [vmem:[#allocation0] sm:$0x1] %vm7_vm0, %v6_v3  }
  0x12   :  { %17 = vrot.lane.b32.xlu0 %v16_v2, %s30_s8 }
  0x7c   :  { %v12_v4 = vpop.permute.xlu0 %11  }
  0x7d   :  { %14 = vst.msk [vmem:[#allocation0] sm:$0x1] %vm13_vm1, %v12_v4  }
  0x84   :  { %v18_v5 = vpop.permute.xlu0 %17  }
  0x85   :  { %20 = vst.msk [vmem:[#allocation0] sm:$0x1] %vm19_vm2, %v18_v5  }
  0x8c   :  { %v23_v6 = vld [vmem:[#allocation0] sm:$0x1] }
  0x8d   :  { %26 = vst [vmem:[%s48_s1] sm:$0x1] %v23_v6 }

// kernel: alarm_forward.9
= control target key start
LH: loop header
LB: loop body
LE: loop exit
PB: predicated region body
PF: predicated region fallthrough
CT: control target
= control target key end

     0   :  { %s423_s1 = inlined_call_operand.vmem [shape: bf16[128,128], index: 1, kind: input, shape index: {}, may-alias: {0,1}]   ;;  %s424_s0 = inlined_call_operand.vmem [shape: bf16[128,128], index: 0, kind: input, shape index: {}, may-alias: {0,1}]   ;;  %s425_s2 = inlined_call_operand.vmem [shape: f32[128,128], index: 2, kind: output, shape index: {}]  }
   0x1   :  { %v287_v0 = vld [vmem:[%s423_s1 + $0x38] sm:$0xff]  ;;  %v286_v1 = vld [vmem:[%s423_s1 + $0x30] sm:$0xff]  ;;  %v285_v2 = vld [vmem:[%s423_s1 + $0x28] sm:$0xff] }
   0x2   :  { %139 = vmatpush.bf16.xpose.msra.mxu0 %v287_v0  ;;  %288 = vmatpush.bf16.xpose.msra.mxu1 %v287_v0  ;;  %v284_v3 = vld [vmem:[%s423_s1 + $0x20] sm:$0xff]  ;;  %v283_v4 = vld [vmem:[%s423_s1 + $0x18] sm:$0xff]  ;;  %v282_v5 = vld [vmem:[%s423_s1 + $0x10] sm:$0xff] }
   0x3   :  { %289 = vmatpush.bf16.xpose.msra.mxu2 %v287_v0  ;;  %290 = vmatpush.bf16.xpose.msra.mxu3 %v287_v0  ;;  %v281_v6 = vld [vmem:[%s423_s1 + $0x8] sm:$0xff]  ;;  %v280_v7 = vld [vmem:[%s423_s1] sm:$0xff]  ;;  %v274_v9 = vld [vmem:[%s424_s0 + $0x10] sm:$0xff] }
   0x4   :  { %v272_v8 = vld [vmem:[%s424_s0] sm:$0xff]  ;;  %v278_v11 = vld [vmem:[%s424_s0 + $0x30] sm:$0xff]  ;;  %v273_v12 = vld [vmem:[%s424_s0 + $0x8] sm:$0xff] }
   0x5   :  { %v276_v10 = vld [vmem:[%s424_s0 + $0x20] sm:$0xff]  ;;  %v275_v13 = vld [vmem:[%s424_s0 + $0x18] sm:$0xff]  ;;  %v277_v14 = vld [vmem:[%s424_s0 + $0x28] sm:$0xff] }
   0x6   :  { %v279_v15 = vld [vmem:[%s424_s0 + $0x38] sm:$0xff] }
   0xa   :  { %140 = vmatpush.bf16.xpose.msra.mxu0 %v286_v1  ;;  %291 = vmatpush.bf16.xpose.msra.mxu1 %v286_v1 }
   0xb   :  { %292 = vmatpush.bf16.xpose.msra.mxu2 %v286_v1  ;;  %293 = vmatpush.bf16.xpose.msra.mxu3 %v286_v1 }
  0x12   :  { %141 = vmatpush.bf16.xpose.msra.mxu0 %v285_v2  ;;  %294 = vmatpush.bf16.xpose.msra.mxu1 %v285_v2 }
  0x13   :  { %295 = vmatpush.bf16.xpose.msra.mxu2 %v285_v2  ;;  %296 = vmatpush.bf16.xpose.msra.mxu3 %v285_v2 }
  0x1a   :  { %142 = vmatpush.bf16.xpose.msra.mxu0 %v284_v3  ;;  %297 = vmatpush.bf16.xpose.msra.mxu1 %v284_v3 }
  0x1b   :  { %298 = vmatpush.bf16.xpose.msra.mxu2 %v284_v3  ;;  %299 = vmatpush.bf16.xpose.msra.mxu3 %v284_v3 }
  0x22   :  { %143 = vmatpush.bf16.xpose.msra.mxu0 %v283_v4  ;;  %300 = vmatpush.bf16.xpose.msra.mxu1 %v283_v4 }
  0x23   :  { %301 = vmatpush.bf16.xpose.msra.mxu2 %v283_v4  ;;  %302 = vmatpush.bf16.xpose.msra.mxu3 %v283_v4 }
  0x2a   :  { %144 = vmatpush.bf16.xpose.msra.mxu0 %v282_v5  ;;  %303 = vmatpush.bf16.xpose.msra.mxu1 %v282_v5 }
  0x2b   :  { %304 = vmatpush.bf16.xpose.msra.mxu2 %v282_v5  ;;  %305 = vmatpush.bf16.xpose.msra.mxu3 %v282_v5 }
  0x32   :  { %145 = vmatpush.bf16.xpose.msra.mxu0 %v281_v6  ;;  %306 = vmatpush.bf16.xpose.msra.mxu1 %v281_v6 }
  0x33   :  { %307 = vmatpush.bf16.xpose.msra.mxu2 %v281_v6  ;;  %308 = vmatpush.bf16.xpose.msra.mxu3 %v281_v6 }
  0x3a   :  { %146 = vmatpush.bf16.xpose.msra.mxu0 %v280_v7  ;;  %309 = vmatpush.bf16.xpose.msra.mxu1 %v280_v7 }
  0x3b   :  { %310 = vmatpush.bf16.xpose.msra.mxu2 %v280_v7  ;;  %311 = vmatpush.bf16.xpose.msra.mxu3 %v280_v7 }
  0x41   :  { %147 = vmatmul.bf16.vlgmr.msra.gmra.mxu0 %v272_v8  ;;  %157 = vmatmul.bf16.vlgmr.msra.gmra.mxu1 %v274_v9 }
  0x42   :  { %167 = vmatmul.bf16.vlgmr.msra.gmra.mxu2 %v276_v10  ;;  %177 = vmatmul.bf16.vlgmr.msra.gmra.mxu3 %v278_v11 }
  0x51   :  { %152 = vmatmul.bf16.gmra.mxu0 %v273_v12  ;;  %162 = vmatmul.bf16.gmra.mxu1 %v275_v13 }
  0x52   :  { %172 = vmatmul.bf16.gmra.mxu2 %v277_v14  ;;  %182 = vmatmul.bf16.gmra.mxu3 %v279_v15 }
  0xbe   :  { %v148_v16 = vpop.f32.mrf.mxu0  ;;  %v158_v17 = vpop.f32.mrf.mxu1 }
  0xbf   :  { %188 = vst [vmem:[%s425_s2] sm:$0xff] %v148_v16 }
  0xc0   :  { %192 = vst [vmem:[%s425_s2 + $0x20] sm:$0xff] %v158_v17 }
  0xc5   :  { %v168_v18 = vpop.f32.mrf.mxu2  ;;  %v178_v19 = vpop.f32.mrf.mxu3 }
  0xc6   :  { %196 = vst [vmem:[%s425_s2 + $0x40] sm:$0xff] %v168_v18  ;;  %v150_v20 = vpop.f32.mrf.mxu0  ;;  %v160_v21 = vpop.f32.mrf.mxu1 }
  0xc7   :  { %200 = vst [vmem:[%s425_s2 + $0x60] sm:$0xff] %v178_v19 }
  0xc8   :  { %189 = vst [vmem:[%s425_s2 + $0x8] sm:$0xff] %v150_v20 }
  0xc9   :  { %193 = vst [vmem:[%s425_s2 + $0x28] sm:$0xff] %v160_v21 }
  0xcd   :  { %v170_v22 = vpop.f32.mrf.mxu2  ;;  %v180_v23 = vpop.f32.mrf.mxu3 }
  0xce   :  { %197 = vst [vmem:[%s425_s2 + $0x48] sm:$0xff] %v170_v22  ;;  %v153_v24 = vpop.f32.mrf.mxu0  ;;  %v163_v25 = vpop.f32.mrf.mxu1 }
  0xcf   :  { %201 = vst [vmem:[%s425_s2 + $0x68] sm:$0xff] %v180_v23 }
  0xd0   :  { %190 = vst [vmem:[%s425_s2 + $0x10] sm:$0xff] %v153_v24 }
  0xd1   :  { %194 = vst [vmem:[%s425_s2 + $0x30] sm:$0xff] %v163_v25 }
  0xd5   :  { %v173_v26 = vpop.f32.mrf.mxu2  ;;  %v183_v27 = vpop.f32.mrf.mxu3 }
  0xd6   :  { %198 = vst [vmem:[%s425_s2 + $0x50] sm:$0xff] %v173_v26  ;;  %v155_v28 = vpop.f32.mrf.mxu0  ;;  %v165_v29 = vpop.f32.mrf.mxu1 }
  0xd7   :  { %202 = vst [vmem:[%s425_s2 + $0x70] sm:$0xff] %v183_v27 }
  0xd8   :  { %191 = vst [vmem:[%s425_s2 + $0x18] sm:$0xff] %v155_v28 }
  0xd9   :  { %195 = vst [vmem:[%s425_s2 + $0x38] sm:$0xff] %v165_v29 }
  0xdd   :  { %v175_v30 = vpop.f32.mrf.mxu2  ;;  %v185_v31 = vpop.f32.mrf.mxu3 }
  0xde   :  { %199 = vst [vmem:[%s425_s2 + $0x58] sm:$0xff] %v175_v30 }
  0xdf   :  { %203 = vst [vmem:[%s425_s2 + $0x78] sm:$0xff] %v185_v31 }

// kernel: alarm_forward.5
= control target key start
LH: loop header
LB: loop body
LE: loop exit
PB: predicated region body
PF: predicated region fallthrough
CT: control target
= control target key end

     0   :  { %s494_s1 = inlined_call_operand.vmem [shape: bf16[128,128], index: 1, kind: input, shape index: {}]   ;;  %s495_s2 = inlined_call_operand.vmem [shape: f32[1,128], index: 2, kind: input, shape index: {}]   ;;  %s496_s0 = inlined_call_operand.vmem [shape: bf16[128,128], index: 0, kind: input, shape index: {}]   ;;  %s497_s3 = inlined_call_operand.vmem [shape: bf16[128,128], index: 3, kind: output, shape index: {}]  }
   0x1   :  { %v326_v0 = vld [vmem:[%s494_s1 + $0x38] sm:$0xff]  ;;  %v325_v1 = vld [vmem:[%s494_s1 + $0x30] sm:$0xff]  ;;  %v324_v2 = vld [vmem:[%s494_s1 + $0x28] sm:$0xff] }
   0x2   :  { %146 = vmatpush.bf16.msra.mxu0 %v326_v0  ;;  %374 = vmatpush.bf16.msra.mxu1 %v326_v0  ;;  %v323_v3 = vld [vmem:[%s494_s1 + $0x20] sm:$0xff]  ;;  %v322_v4 = vld [vmem:[%s494_s1 + $0x18] sm:$0xff]  ;;  %v321_v5 = vld [vmem:[%s494_s1 + $0x10] sm:$0xff] }
   0x3   :  { %375 = vmatpush.bf16.msra.mxu2 %v326_v0  ;;  %376 = vmatpush.bf16.msra.mxu3 %v326_v0  ;;  %v320_v6 = vld [vmem:[%s494_s1 + $0x8] sm:$0xff]  ;;  %v319_v7 = vld [vmem:[%s494_s1] sm:$0xff]  ;;  %v313_v9 = vld [vmem:[%s496_s0 + $0x10] sm:$0xff] }
   0x4   :  { %v311_v8 = vld [vmem:[%s496_s0] sm:$0xff]  ;;  %v317_v11 = vld [vmem:[%s496_s0 + $0x30] sm:$0xff]  ;;  %v312_v12 = vld [vmem:[%s496_s0 + $0x8] sm:$0xff] }
   0x5   :  { %v315_v10 = vld [vmem:[%s496_s0 + $0x20] sm:$0xff]  ;;  %v314_v13 = vld [vmem:[%s496_s0 + $0x18] sm:$0xff]  ;;  %v316_v14 = vld [vmem:[%s496_s0 + $0x28] sm:$0xff] }
   0x6   :  { %147 = vmatpush.bf16.msra.mxu0 %v325_v1  ;;  %377 = vmatpush.bf16.msra.mxu1 %v325_v1  ;;  %v318_v15 = vld [vmem:[%s496_s0 + $0x38] sm:$0xff]  ;;  %v398_v18 = vld [vmem:[%s495_s2] ss:$0 sm:$0xff] }
   0x7   :  { %378 = vmatpush.bf16.msra.mxu2 %v325_v1  ;;  %379 = vmatpush.bf16.msra.mxu3 %v325_v1 }
   0xa   :  { %148 = vmatpush.bf16.msra.mxu0 %v324_v2  ;;  %380 = vmatpush.bf16.msra.mxu1 %v324_v2 }
   0xb   :  { %381 = vmatpush.bf16.msra.mxu2 %v324_v2  ;;  %382 = vmatpush.bf16.msra.mxu3 %v324_v2 }
   0xe   :  { %149 = vmatpush.bf16.msra.mxu0 %v323_v3  ;;  %383 = vmatpush.bf16.msra.mxu1 %v323_v3 }
   0xf   :  { %384 = vmatpush.bf16.msra.mxu2 %v323_v3  ;;  %385 = vmatpush.bf16.msra.mxu3 %v323_v3 }
  0x12   :  { %150 = vmatpush.bf16.msra.mxu0 %v322_v4  ;;  %386 = vmatpush.bf16.msra.mxu1 %v322_v4 }
  0x13   :  { %387 = vmatpush.bf16.msra.mxu2 %v322_v4  ;;  %388 = vmatpush.bf16.msra.mxu3 %v322_v4 }
  0x16   :  { %151 = vmatpush.bf16.msra.mxu0 %v321_v5  ;;  %389 = vmatpush.bf16.msra.mxu1 %v321_v5 }
  0x17   :  { %390 = vmatpush.bf16.msra.mxu2 %v321_v5  ;;  %391 = vmatpush.bf16.msra.mxu3 %v321_v5 }
  0x1a   :  { %152 = vmatpush.bf16.msra.mxu0 %v320_v6  ;;  %392 = vmatpush.bf16.msra.mxu1 %v320_v6 }
  0x1b   :  { %393 = vmatpush.bf16.msra.mxu2 %v320_v6  ;;  %394 = vmatpush.bf16.msra.mxu3 %v320_v6 }
  0x1e   :  { %153 = vmatpush.bf16.msra.mxu0 %v319_v7  ;;  %395 = vmatpush.bf16.msra.mxu1 %v319_v7 }
  0x1f   :  { %396 = vmatpush.bf16.msra.mxu2 %v319_v7  ;;  %397 = vmatpush.bf16.msra.mxu3 %v319_v7 }
  0x21   :  { %154 = vmatmul.bf16.vlgmr.msra.gmra.mxu0 %v311_v8  ;;  %164 = vmatmul.bf16.vlgmr.msra.gmra.mxu1 %v313_v9 }
  0x22   :  { %174 = vmatmul.bf16.vlgmr.msra.gmra.mxu2 %v315_v10  ;;  %184 = vmatmul.bf16.vlgmr.msra.gmra.mxu3 %v317_v11 }
  0x31   :  { %159 = vmatmul.bf16.gmra.mxu0 %v312_v12  ;;  %169 = vmatmul.bf16.gmra.mxu1 %v314_v13 }
  0x32   :  { %179 = vmatmul.bf16.gmra.mxu2 %v316_v14  ;;  %189 = vmatmul.bf16.gmra.mxu3 %v318_v15 }
  0x9e   :  { %v155_v16 = vpop.f32.mrf.mxu0  ;;  %v165_v17 = vpop.f32.mrf.mxu1 }
  0x9f   :  { %v156_v19 = vadd.f32 %v398_v18, %v155_v16  ;;  %v166_v20 = vadd.f32 %v398_v18, %v165_v17 }
  0xa1   :  { %v195_v27 = vmax.f32 %v156_v19, 0.0  ;;  %v199_v28 = vmax.f32 %v166_v20, 0.0 }
  0xa5   :  { %v175_v21 = vpop.f32.mrf.mxu2  ;;  %v185_v22 = vpop.f32.mrf.mxu3 }
  0xa6   :  { %v157_v23 = vpop.f32.mrf.mxu0  ;;  %v167_v24 = vpop.f32.mrf.mxu1  ;;  %v176_v33 = vadd.f32 %v398_v18, %v175_v21  ;;  %v186_v34 = vadd.f32 %v398_v18, %v185_v22 }
  0xa7   :  { %v158_v25 = vadd.f32 %v398_v18, %v157_v23  ;;  %v168_v26 = vadd.f32 %v398_v18, %v167_v24 }
  0xa8   :  { %v203_v41 = vmax.f32 %v176_v33, 0.0  ;;  %v207_v42 = vmax.f32 %v186_v34, 0.0 }
  0xa9   :  { %v196_v29 = vmax.f32 %v158_v25, 0.0  ;;  %v200_v30 = vmax.f32 %v168_v26, 0.0 }
  0xab   :  { %v330_v31 = vpack.c.bf16 %v196_v29, %v195_v27  ;;  %v340_v32 = vpack.c.bf16 %v200_v30, %v199_v28 }
  0xad   :  { %331 = vst [vmem:[%s497_s3] sm:$0xff] %v330_v31   ;;  %v177_v35 = vpop.f32.mrf.mxu2  ;;  %v187_v36 = vpop.f32.mrf.mxu3 }
  0xae   :  { %368 = vst [vmem:[%s497_s3 + $0x10] sm:$0xff] %v340_v32   ;;  %v178_v37 = vadd.f32 %v398_v18, %v177_v35  ;;  %v188_v38 = vadd.f32 %v398_v18, %v187_v36  ;;  %v160_v39 = vpop.f32.mrf.mxu0  ;;  %v170_v40 = vpop.f32.mrf.mxu1 }
  0xaf   :  { %v161_v47 = vadd.f32 %v398_v18, %v160_v39  ;;  %v171_v48 = vadd.f32 %v398_v18, %v170_v40 }
  0xb0   :  { %v204_v43 = vmax.f32 %v178_v37, 0.0  ;;  %v208_v44 = vmax.f32 %v188_v38, 0.0 }
  0xb1   :  { %v197_v55 = vmax.f32 %v161_v47, 0.0  ;;  %v201_v56 = vmax.f32 %v171_v48, 0.0 }
  0xb2   :  { %v350_v45 = vpack.c.bf16 %v204_v43, %v203_v41  ;;  %v360_v46 = vpack.c.bf16 %v208_v44, %v207_v42 }
  0xb4   :  { %370 = vst [vmem:[%s497_s3 + $0x20] sm:$0xff] %v350_v45  }
  0xb5   :  { %372 = vst [vmem:[%s497_s3 + $0x30] sm:$0xff] %v360_v46   ;;  %v180_v49 = vpop.f32.mrf.mxu2  ;;  %v190_v50 = vpop.f32.mrf.mxu3 }
  0xb6   :  { %v162_v51 = vpop.f32.mrf.mxu0  ;;  %v172_v52 = vpop.f32.mrf.mxu1  ;;  %v181_v61 = vadd.f32 %v398_v18, %v180_v49  ;;  %v191_v62 = vadd.f32 %v398_v18, %v190_v50 }
  0xb7   :  { %v163_v53 = vadd.f32 %v398_v18, %v162_v51  ;;  %v173_v54 = vadd.f32 %v398_v18, %v172_v52 }
  0xb8   :  { %v205_v3 = vmax.f32 %v181_v61, 0.0  ;;  %v209_v4 = vmax.f32 %v191_v62, 0.0 }
  0xb9   :  { %v198_v57 = vmax.f32 %v163_v53, 0.0  ;;  %v202_v58 = vmax.f32 %v173_v54, 0.0 }
  0xbb   :  { %v335_v59 = vpack.c.bf16 %v198_v57, %v197_v55  ;;  %v345_v60 = vpack.c.bf16 %v202_v58, %v201_v56 }
  0xbd   :  { %367 = vst [vmem:[%s497_s3 + $0x8] sm:$0xff] %v335_v59   ;;  %v182_v63 = vpop.f32.mrf.mxu2  ;;  %v192_v0 = vpop.f32.mrf.mxu3 }
  0xbe   :  { %369 = vst [vmem:[%s497_s3 + $0x18] sm:$0xff] %v345_v60   ;;  %v183_v1 = vadd.f32 %v398_v18, %v182_v63  ;;  %v193_v2 = vadd.f32 %v398_v18, %v192_v0 }
  0xc0   :  { %v206_v5 = vmax.f32 %v183_v1, 0.0  ;;  %v210_v6 = vmax.f32 %v193_v2, 0.0 }
  0xc2   :  { %v355_v7 = vpack.c.bf16 %v206_v5, %v205_v3  ;;  %v365_v8 = vpack.c.bf16 %v210_v6, %v209_v4 }
  0xc4   :  { %371 = vst [vmem:[%s497_s3 + $0x28] sm:$0xff] %v355_v7  }
  0xc5   :  { %373 = vst [vmem:[%s497_s3 + $0x38] sm:$0xff] %v365_v8  }

// kernel: alarm_forward.8
= control target key start
LH: loop header
LB: loop body
LE: loop exit
PB: predicated region body
PF: predicated region fallthrough
CT: control target
= control target key end

     0   :  { %s658_s1 = inlined_call_operand.vmem [shape: bf16[128,128], index: 1, kind: input, shape index: {}]   ;;  %s659_s0 = inlined_call_operand.vmem [shape: bf16[128,128], index: 0, kind: input, shape index: {}]   ;;  %s660_s2 = inlined_call_operand.vmem [shape: bf16[128,128], index: 2, kind: input, shape index: {}]   ;;  %s661_s3 = inlined_call_operand.vmem [shape: f32[1,128], index: 3, kind: input, shape index: {}]   ;;  %s662_s4 = inlined_call_operand.vmem [shape: f32[128,128], index: 4, kind: output, shape index: {}]  }
   0x1   :  { %v466_v0 = vld [vmem:[%s658_s1 + $0x38] sm:$0xff]  ;;  %v465_v1 = vld [vmem:[%s658_s1 + $0x30] sm:$0xff]  ;;  %v464_v2 = vld [vmem:[%s658_s1 + $0x28] sm:$0xff] }
   0x2   :  { %145 = vmatpush.bf16.msra.mxu0 %v466_v0  ;;  %475 = vmatpush.bf16.msra.mxu2 %v466_v0  ;;  %v463_v3 = vld [vmem:[%s658_s1 + $0x20] sm:$0xff]  ;;  %v462_v4 = vld [vmem:[%s658_s1 + $0x18] sm:$0xff]  ;;  %v461_v5 = vld [vmem:[%s658_s1 + $0x10] sm:$0xff] }
   0x3   :  { %v460_v6 = vld [vmem:[%s658_s1 + $0x8] sm:$0xff]  ;;  %v459_v7 = vld [vmem:[%s658_s1] sm:$0xff]  ;;  %v474_v12 = vld [vmem:[%s660_s2 + $0x38] sm:$0xff] }
   0x4   :  { %v451_v8 = vld [vmem:[%s659_s0] sm:$0xff]  ;;  %v452_v10 = vld [vmem:[%s659_s0 + $0x8] sm:$0xff]  ;;  %270 = vmatpush.bf16.msra.mxu1 %v474_v12  ;;  %v473_v13 = vld [vmem:[%s660_s2 + $0x30] sm:$0xff]  ;;  %483 = vmatpush.bf16.msra.mxu3 %v474_v12 }
   0x5   :  { %v455_v9 = vld [vmem:[%s659_s0 + $0x20] sm:$0xff]  ;;  %v456_v11 = vld [vmem:[%s659_s0 + $0x28] sm:$0xff]  ;;  %v453_v16 = vld [vmem:[%s659_s0 + $0x10] sm:$0xff] }
   0x6   :  { %146 = vmatpush.bf16.msra.mxu0 %v465_v1  ;;  %476 = vmatpush.bf16.msra.mxu2 %v465_v1  ;;  %v472_v14 = vld [vmem:[%s660_s2 + $0x28] sm:$0xff]  ;;  %v471_v15 = vld [vmem:[%s660_s2 + $0x20] sm:$0xff]  ;;  %v457_v17 = vld [vmem:[%s659_s0 + $0x30] sm:$0xff] }
   0x7   :  { %v470_v18 = vld [vmem:[%s660_s2 + $0x18] sm:$0xff]  ;;  %v469_v21 = vld [vmem:[%s660_s2 + $0x10] sm:$0xff]  ;;  %v468_v22 = vld [vmem:[%s660_s2 + $0x8] sm:$0xff] }
   0x8   :  { %271 = vmatpush.bf16.msra.mxu1 %v473_v13  ;;  %484 = vmatpush.bf16.msra.mxu3 %v473_v13  ;;  %v454_v19 = vld [vmem:[%s659_s0 + $0x18] sm:$0xff]  ;;  %v467_v23 = vld [vmem:[%s660_s2] sm:$0xff] }
   0x9   :  { %v458_v20 = vld [vmem:[%s659_s0 + $0x38] sm:$0xff]  ;;  %v592_v48 = vld [vmem:[%s661_s3] ss:$0 sm:$0xff] }
   0xa   :  { %147 = vmatpush.bf16.msra.mxu0 %v464_v2  ;;  %477 = vmatpush.bf16.msra.mxu2 %v464_v2 }
   0xc   :  { %272 = vmatpush.bf16.msra.mxu1 %v472_v14  ;;  %485 = vmatpush.bf16.msra.mxu3 %v472_v14 }
   0xe   :  { %148 = vmatpush.bf16.msra.mxu0 %v463_v3  ;;  %478 = vmatpush.bf16.msra.mxu2 %v463_v3 }
  0x10   :  { %273 = vmatpush.bf16.msra.mxu1 %v471_v15  ;;  %486 = vmatpush.bf16.msra.mxu3 %v471_v15 }
  0x12   :  { %149 = vmatpush.bf16.msra.mxu0 %v462_v4  ;;  %479 = vmatpush.bf16.msra.mxu2 %v462_v4 }
  0x14   :  { %274 = vmatpush.bf16.msra.mxu1 %v470_v18  ;;  %487 = vmatpush.bf16.msra.mxu3 %v470_v18 }
  0x16   :  { %150 = vmatpush.bf16.msra.mxu0 %v461_v5  ;;  %480 = vmatpush.bf16.msra.mxu2 %v461_v5 }
  0x18   :  { %275 = vmatpush.bf16.msra.mxu1 %v469_v21  ;;  %488 = vmatpush.bf16.msra.mxu3 %v469_v21 }
  0x1a   :  { %151 = vmatpush.bf16.msra.mxu0 %v460_v6  ;;  %481 = vmatpush.bf16.msra.mxu2 %v460_v6 }
  0x1c   :  { %276 = vmatpush.bf16.msra.mxu1 %v468_v22  ;;  %489 = vmatpush.bf16.msra.mxu3 %v468_v22 }
  0x1e   :  { %152 = vmatpush.bf16.msra.mxu0 %v459_v7  ;;  %482 = vmatpush.bf16.msra.mxu2 %v459_v7 }
  0x20   :  { %277 = vmatpush.bf16.msra.mxu1 %v467_v23  ;;  %490 = vmatpush.bf16.msra.mxu3 %v467_v23 }
  0x21   :  { %153 = vmatmul.bf16.vlgmr.msra.gmra.mxu0 %v451_v8  ;;  %173 = vmatmul.bf16.vlgmr.msra.gmra.mxu2 %v455_v9 }
  0x31   :  { %158 = vmatmul.bf16.gmra.mxu0 %v452_v10  ;;  %178 = vmatmul.bf16.gmra.mxu2 %v456_v11 }
  0x41   :  { %163 = vmatmul.bf16.gmra.mxu0 %v453_v16  ;;  %183 = vmatmul.bf16.gmra.mxu2 %v457_v17 }
  0x51   :  { %168 = vmatmul.bf16.gmra.mxu0 %v454_v19  ;;  %188 = vmatmul.bf16.gmra.mxu2 %v458_v20 }
  0x9e   :  { %v154_v24 = vpop.f32.mrf.mxu0 }
  0xa4   :  { %v174_v25 = vpop.f32.mrf.mxu2 }
  0xa6   :  { %v156_v26 = vpop.f32.mrf.mxu0 }
  0xa7   :  { %v194_v27 = vpack.c.bf16 %v156_v26, %v154_v24 }
  0xa9   :  { %278 = vmatmul.bf16.vlgmr.msra.gmra.mxu1 %v194_v27 }
  0xac   :  { %v176_v28 = vpop.f32.mrf.mxu2 }
  0xad   :  { %v198_v29 = vpack.c.bf16 %v176_v28, %v174_v25 }
  0xae   :  { %v159_v30 = vpop.f32.mrf.mxu0 }
  0xaf   :  { %298 = vmatmul.bf16.vlgmr.msra.gmra.mxu3 %v198_v29 }
  0xb4   :  { %v179_v31 = vpop.f32.mrf.mxu2 }
  0xb6   :  { %v161_v32 = vpop.f32.mrf.mxu0 }
  0xb7   :  { %v195_v33 = vpack.c.bf16 %v161_v32, %v159_v30 }
  0xb9   :  { %283 = vmatmul.bf16.gmra.mxu1 %v195_v33 }
  0xbc   :  { %v181_v34 = vpop.f32.mrf.mxu2 }
  0xbd   :  { %v199_v35 = vpack.c.bf16 %v181_v34, %v179_v31 }
  0xbe   :  { %v164_v36 = vpop.f32.mrf.mxu0 }
  0xbf   :  { %303 = vmatmul.bf16.gmra.mxu3 %v199_v35 }
  0xc4   :  { %v184_v37 = vpop.f32.mrf.mxu2 }
  0xc6   :  { %v166_v38 = vpop.f32.mrf.mxu0 }
  0xc7   :  { %v196_v39 = vpack.c.bf16 %v166_v38, %v164_v36 }
  0xc9   :  { %288 = vmatmul.bf16.gmra.mxu1 %v196_v39 }
  0xcc   :  { %v186_v40 = vpop.f32.mrf.mxu2 }
  0xcd   :  { %v200_v41 = vpack.c.bf16 %v186_v40, %v184_v37 }
  0xce   :  { %v169_v42 = vpop.f32.mrf.mxu0 }
  0xcf   :  { %308 = vmatmul.bf16.gmra.mxu3 %v200_v41 }
  0xd4   :  { %v189_v43 = vpop.f32.mrf.mxu2 }
  0xd6   :  { %v171_v44 = vpop.f32.mrf.mxu0 }
  0xd7   :  { %v197_v45 = vpack.c.bf16 %v171_v44, %v169_v42 }
  0xd9   :  { %293 = vmatmul.bf16.gmra.mxu1 %v197_v45 }
  0xdc   :  { %v191_v46 = vpop.f32.mrf.mxu2 }
  0xdd   :  { %v201_v47 = vpack.c.bf16 %v191_v46, %v189_v43 }
  0xdf   :  { %313 = vmatmul.bf16.gmra.mxu3 %v201_v47 }
 0x126   :  { %v279_v49 = vpop.f32.mrf.mxu1 }
 0x127   :  { %v280_v50 = vadd.f32 %v592_v48, %v279_v49 }
 0x129   :  { %v319_v51 = vmax.f32 %v280_v50, 0.0 }
 0x12b   :  { %335 = vst [vmem:[%s662_s4] sm:$0xff] %v319_v51 }
 0x12e   :  { %v281_v52 = vpop.f32.mrf.mxu1 }
 0x12f   :  { %v282_v53 = vadd.f32 %v592_v48, %v281_v52 }
 0x131   :  { %v320_v54 = vmax.f32 %v282_v53, 0.0 }
 0x132   :  { %v299_v55 = vpop.f32.mrf.mxu3 }
 0x133   :  { %336 = vst [vmem:[%s662_s4 + $0x8] sm:$0xff] %v320_v54  ;;  %v300_v56 = vadd.f32 %v592_v48, %v299_v55 }
 0x135   :  { %v327_v57 = vmax.f32 %v300_v56, 0.0 }
 0x136   :  { %v284_v58 = vpop.f32.mrf.mxu1 }
 0x137   :  { %343 = vst [vmem:[%s662_s4 + $0x40] sm:$0xff] %v327_v57  ;;  %v285_v59 = vadd.f32 %v592_v48, %v284_v58 }
 0x139   :  { %v321_v60 = vmax.f32 %v285_v59, 0.0 }
 0x13a   :  { %v301_v61 = vpop.f32.mrf.mxu3 }
 0x13b   :  { %337 = vst [vmem:[%s662_s4 + $0x10] sm:$0xff] %v321_v60  ;;  %v302_v62 = vadd.f32 %v592_v48, %v301_v61 }
 0x13d   :  { %v328_v63 = vmax.f32 %v302_v62, 0.0 }
 0x13e   :  { %v286_v0 = vpop.f32.mrf.mxu1 }
 0x13f   :  { %344 = vst [vmem:[%s662_s4 + $0x48] sm:$0xff] %v328_v63  ;;  %v287_v1 = vadd.f32 %v592_v48, %v286_v0 }
 0x141   :  { %v322_v2 = vmax.f32 %v287_v1, 0.0 }
 0x142   :  { %v304_v3 = vpop.f32.mrf.mxu3 }
 0x143   :  { %338 = vst [vmem:[%s662_s4 + $0x18] sm:$0xff] %v322_v2  ;;  %v305_v4 = vadd.f32 %v592_v48, %v304_v3 }
 0x145   :  { %v329_v5 = vmax.f32 %v305_v4, 0.0 }
 0x146   :  { %v289_v6 = vpop.f32.mrf.mxu1 }
 0x147   :  { %345 = vst [vmem:[%s662_s4 + $0x50] sm:$0xff] %v329_v5  ;;  %v290_v7 = vadd.f32 %v592_v48, %v289_v6 }
 0x149   :  { %v323_v8 = vmax.f32 %v290_v7, 0.0 }
 0x14a   :  { %v306_v9 = vpop.f32.mrf.mxu3 }
 0x14b   :  { %339 = vst [vmem:[%s662_s4 + $0x20] sm:$0xff] %v323_v8  ;;  %v307_v10 = vadd.f32 %v592_v48, %v306_v9 }
 0x14d   :  { %v330_v11 = vmax.f32 %v307_v10, 0.0 }
 0x14e   :  { %v291_v12 = vpop.f32.mrf.mxu1 }
 0x14f   :  { %346 = vst [vmem:[%s662_s4 + $0x58] sm:$0xff] %v330_v11  ;;  %v292_v13 = vadd.f32 %v592_v48, %v291_v12 }
 0x151   :  { %v324_v14 = vmax.f32 %v292_v13, 0.0 }
 0x152   :  { %v309_v15 = vpop.f32.mrf.mxu3 }
 0x153   :  { %340 = vst [vmem:[%s662_s4 + $0x28] sm:$0xff] %v324_v14  ;;  %v310_v16 = vadd.f32 %v592_v48, %v309_v15 }
 0x155   :  { %v331_v17 = vmax.f32 %v310_v16, 0.0 }
 0x156   :  { %v294_v18 = vpop.f32.mrf.mxu1 }
 0x157   :  { %347 = vst [vmem:[%s662_s4 + $0x60] sm:$0xff] %v331_v17  ;;  %v295_v19 = vadd.f32 %v592_v48, %v294_v18 }
 0x159   :  { %v325_v20 = vmax.f32 %v295_v19, 0.0 }
 0x15a   :  { %v311_v21 = vpop.f32.mrf.mxu3 }
 0x15b   :  { %341 = vst [vmem:[%s662_s4 + $0x30] sm:$0xff] %v325_v20  ;;  %v312_v22 = vadd.f32 %v592_v48, %v311_v21 }
 0x15d   :  { %v332_v23 = vmax.f32 %v312_v22, 0.0 }
 0x15e   :  { %v296_v24 = vpop.f32.mrf.mxu1 }
 0x15f   :  { %348 = vst [vmem:[%s662_s4 + $0x68] sm:$0xff] %v332_v23  ;;  %v297_v25 = vadd.f32 %v592_v48, %v296_v24 }
 0x161   :  { %v326_v26 = vmax.f32 %v297_v25, 0.0 }
 0x162   :  { %v314_v27 = vpop.f32.mrf.mxu3 }
 0x163   :  { %342 = vst [vmem:[%s662_s4 + $0x38] sm:$0xff] %v326_v26  ;;  %v315_v28 = vadd.f32 %v592_v48, %v314_v27 }
 0x165   :  { %v333_v29 = vmax.f32 %v315_v28, 0.0 }
 0x167   :  { %349 = vst [vmem:[%s662_s4 + $0x70] sm:$0xff] %v333_v29 }
 0x16a   :  { %v316_v30 = vpop.f32.mrf.mxu3 }
 0x16b   :  { %v317_v31 = vadd.f32 %v592_v48, %v316_v30 }
 0x16d   :  { %v334_v32 = vmax.f32 %v317_v31, 0.0 }
 0x16f   :  { %350 = vst [vmem:[%s662_s4 + $0x78] sm:$0xff] %v334_v32 }

</bundles_post_ra>
